<compile_context>
chip_gen: v6e
topology: v6e:2x2x1
jax: 0.10.0
libtpu: 0.0.40
codegen_flags: <defaults>
</compile_context>

<pallas_src>
import functools
import math

import jax
import jax.numpy as jnp
import numpy as np
from jax.experimental import pallas as pl
from jax.experimental.pallas import tpu as pltpu


# ----------------------------------------------------------------------------
# Kernel 1: Q/K/V projections in transposed layout:  qT = Wq @ xT + bq
#   (Wq in torch nn.Linear layout [A, F], xT = x.T [F, N]).
#   qT/kT stored in bf16 (they are only ever MXU operands downstream); vT in f32.
# ----------------------------------------------------------------------------
def _project_kernel(xT_ref, wq_ref, bq_ref, wk_ref, bk_ref, wv_ref, bv_ref,
                    qT_ref, kT_ref, vT_ref):
    xT = xT_ref[...]
    q = jnp.dot(wq_ref[...], xT, preferred_element_type=jnp.float32) + bq_ref[...]
    k = jnp.dot(wk_ref[...], xT, preferred_element_type=jnp.float32) + bk_ref[...]
    v = jnp.dot(wv_ref[...], xT, preferred_element_type=jnp.float32) + bv_ref[...]
    qT_ref[...] = q.astype(qT_ref.dtype)
    kT_ref[...] = k.astype(kT_ref.dtype)
    vT_ref[...] = v.astype(vT_ref.dtype)


# ----------------------------------------------------------------------------
# Kernel 2: per-edge-block scaled-dot prods + online segment (max, sum) stats.
# ----------------------------------------------------------------------------
def _edge_stats_kernel(qT_ref, kT_ref, esrc_ref, edst_ref,
                       prods_ref, m_ref, l_ref, *, heads, d_k, norm_idx):
    A, N = qT_ref.shape
    TE = esrc_ref.shape[1]

    @pl.when(pl.program_id(0) == 0)
    def _init():
        m_ref[...] = jnp.full(m_ref.shape, -jnp.inf, dtype=jnp.float32)
        l_ref[...] = jnp.zeros(l_ref.shape, dtype=jnp.float32)

    # One-hot edge-index matrices in [N, TE] orientation only (no transposes needed).
    node_iota = jax.lax.broadcasted_iota(jnp.int32, (N, TE), 0)
    onehot_src_b = node_iota == esrc_ref[...]          # [N, TE] bool
    onehot_dst_b = node_iota == edst_ref[...]
    onehot_src = onehot_src_b.astype(jnp.bfloat16)     # 0/1 exact in bf16
    onehot_dst = onehot_dst_b.astype(jnp.bfloat16)

    # Gather q[edge[0]] / k[edge[1]] (transposed) via one-hot matmuls: bf16 in, f32 acc.
    q_src = jnp.dot(qT_ref[...], onehot_src, preferred_element_type=jnp.float32)  # [A, TE]
    k_dst = jnp.dot(kT_ref[...], onehot_dst, preferred_element_type=jnp.float32)  # [A, TE]

    # Per-head reduction with the 1/sqrt(d_k) scale folded into the constant matrix.
    # Output [heads, TE] -> lane-dense (TE on lanes), MXU-friendly.
    h_iota = jax.lax.broadcasted_iota(jnp.int32, (heads, A), 0)
    a_iota = jax.lax.broadcasted_iota(jnp.int32, (heads, A), 1)
    reduce_mat = jnp.where((a_iota // d_k) == h_iota,
                           jnp.float32(1.0 / math.sqrt(d_k)), jnp.float32(0.0))
    prods = jnp.dot(reduce_mat, q_src * k_dst,
                    preferred_element_type=jnp.float32)                      # [heads, TE]
    prods_ref[...] = prods

    # Segment softmax stats over edge[norm_idx]; dedupe the norm one-hot.
    onehot_norm_b = onehot_src_b if norm_idx == 0 else onehot_dst_b
    onehot_norm = onehot_src if norm_idx == 0 else onehot_dst

    # Block max per segment & head: lane-axis reduce on the [N, TE] one-hot (no 3D tensor).
    m_old = m_ref[...]                                                       # [N, heads]
    bmax_cols = []
    for h in range(heads):
        masked = jnp.where(onehot_norm_b, prods[h:h + 1, :], -jnp.inf)       # [N, TE]
        bmax_cols.append(jnp.max(masked, axis=-1, keepdims=True))            # [N, 1]
    bmax = jnp.concatenate(bmax_cols, axis=-1)                               # [N, heads]
    m_new = jnp.maximum(m_old, bmax)

    # Online-softmax rescale of the running sum (guard untouched segments, m == -inf).
    untouched = m_new == -jnp.inf
    alpha = jnp.where(untouched, 0.0, jnp.exp(m_old - m_new))                # [N, heads]

    # exp(prods - m_new[seg]) per edge: gather m_new through the exact one-hot matmul.
    m_safe = jnp.where(untouched, 0.0, m_new)          # kill -inf so 0*inf never hits the MXU
    m_gath = jnp.dot(m_safe.T.astype(jnp.bfloat16), onehot_norm,
                     preferred_element_type=jnp.float32)                     # [heads, TE]
    ex = jnp.exp(prods - m_gath)                                             # [heads, TE]

    # Scatter-add per-segment sums: [N, TE] @ [TE, heads] on the MXU.
    bsum = jnp.dot(onehot_norm, ex.T.astype(jnp.bfloat16),
                   preferred_element_type=jnp.float32)                       # [N, heads]

    l_ref[...] = alpha * l_ref[...] + bsum
    m_ref[...] = m_new


# ----------------------------------------------------------------------------
# Kernel 3: normalize -> attention = exp(prods - m[seg]) / (l[seg] + 1e-16).
# ----------------------------------------------------------------------------
def _normalize_kernel(prods_ref, mT_ref, lT_ref, enorm_ref, att_ref):
    heads, N = mT_ref.shape
    TE = enorm_ref.shape[1]

    node_iota = jax.lax.broadcasted_iota(jnp.int32, (N, TE), 0)
    onehot = (node_iota == enorm_ref[...]).astype(jnp.bfloat16)              # [N, TE]

    m = mT_ref[...]
    m = jnp.where(m == -jnp.inf, 0.0, m)        # empty segments (matches reference clamp)
    m_gath = jnp.dot(m.astype(jnp.bfloat16), onehot,
                     preferred_element_type=jnp.float32)                     # [heads, TE]
    l_gath = jnp.dot(lT_ref[...].astype(jnp.bfloat16), onehot,
                     preferred_element_type=jnp.float32)                     # [heads, TE]

    ex = jnp.exp(prods_ref[...] - m_gath)
    att_ref[...] = ex * pl.reciprocal(l_gath + jnp.float32(1e-16), approx=True)


# ----------------------------------------------------------------------------
# Wrapper
# ----------------------------------------------------------------------------
def sp_graph_trans_attention(x, edge, Wq, bq, Wk, bk, Wv, bv, *,
                             heads, norm_idx=0, edge_tile=128,
                             vmem_limit_bytes=32 * 1024 * 1024):
    """Forward of SpGraphTransAttentionLayer (scaled_dot / softmax path).

    Weights are in torch nn.Linear layout (W*: [attention_dim, in_features], b*: [A]).
    Returns (attention [E, heads], (v [N, d_k, heads], prods [E, heads])).
    """
    assert edge_tile % 128 == 0
    assert norm_idx in (0, 1)
    N, F = x.shape
    A, _ = Wq.shape
    d_k = A // heads
    E = edge.shape[1]
    f32 = jnp.float32

    # Pad the edge axis to whole tiles.  Padded edges use the out-of-range node id N, so
    # their one-hot columns are all zero: they contribute nothing to any segment and their
    # (finite) outputs are sliced off below.
    EB = pl.cdiv(E, edge_tile)
    E_pad = EB * edge_tile
    pad = E_pad - E
    esrc = jnp.pad(edge[0].astype(jnp.int32), (0, pad), constant_values=N).reshape(1, E_pad)
    edst = jnp.pad(edge[1].astype(jnp.int32), (0, pad), constant_values=N).reshape(1, E_pad)
    enorm = esrc if norm_idx == 0 else edst

    xT = x.astype(f32).T                                                     # [F, N]
    vmem = pl.BlockSpec(memory_space=pltpu.MemorySpace.VMEM)

    # --- Kernel 1: projections (single invocation, all MXU) ------------------
    qT, kT, vT = pl.pallas_call(
        _project_kernel,
        out_shape=(jax.ShapeDtypeStruct((A, N), jnp.bfloat16),
                   jax.ShapeDtypeStruct((A, N), jnp.bfloat16),
                   jax.ShapeDtypeStruct((A, N), f32)),
        in_specs=[vmem] * 7,
        out_specs=(vmem, vmem, vmem),
        compiler_params=pltpu.CompilerParams(vmem_limit_bytes=vmem_limit_bytes),
    )(xT, Wq.astype(f32), bq.reshape(A, 1).astype(f32),
      Wk.astype(f32), bk.reshape(A, 1).astype(f32),
      Wv.astype(f32), bv.reshape(A, 1).astype(f32))

    # --- Kernel 2: per-edge prods + online segment max/sum -------------------
    cost2 = pl.CostEstimate(
        flops=(4 * A * N + 2 * heads * A + 4 * heads * N) * E_pad,
        transcendentals=heads * E_pad + N * heads * EB,
        bytes_accessed=4 * (2 * A * N + 2 * E_pad + heads * E_pad + 2 * N * heads))
    prodsT, m, l = pl.pallas_call(
        functools.partial(_edge_stats_kernel, heads=heads, d_k=d_k, norm_idx=norm_idx),
        grid=(EB,),
        in_specs=[
            pl.BlockSpec((A, N), lambda eb: (0, 0)),               # qT: VMEM-resident
            pl.BlockSpec((A, N), lambda eb: (0, 0)),               # kT: VMEM-resident
            pl.BlockSpec((1, edge_tile), lambda eb: (0, eb)),      # esrc tile
            pl.BlockSpec((1, edge_tile), lambda eb: (0, eb)),      # edst tile
        ],
        out_specs=(
            pl.BlockSpec((heads, edge_tile), lambda eb: (0, eb)),  # prods: lane-dense
            pl.BlockSpec((N, heads), lambda eb: (0, 0)),           # running segment max
            pl.BlockSpec((N, heads), lambda eb: (0, 0)),           # running segment sum
        ),
        out_shape=(
            jax.ShapeDtypeStruct((heads, E_pad), f32),
            jax.ShapeDtypeStruct((N, heads), f32),
            jax.ShapeDtypeStruct((N, heads), f32),
        ),
        compiler_params=pltpu.CompilerParams(
            dimension_semantics=("arbitrary",),      # m/l are accumulated across blocks
            vmem_limit_bytes=vmem_limit_bytes),
        cost_estimate=cost2,
    )(qT, kT, esrc, edst)

    # Tiny [N, heads] -> [heads, N] layout plumbing between the two passes.
    mT = m.T
    lT = l.T

    # --- Kernel 3: normalize (fully edge-parallel) ----------------------------
    cost3 = pl.CostEstimate(
        flops=4 * heads * N * E_pad,
        transcendentals=heads * E_pad,
        bytes_accessed=4 * (3 * heads * E_pad + 2 * heads * N + E_pad))
    attT = pl.pallas_call(
        _normalize_kernel,
        grid=(EB,),
        in_specs=[
            pl.BlockSpec((heads, edge_tile), lambda eb: (0, eb)),
            pl.BlockSpec((heads, N), lambda eb: (0, 0)),
            pl.BlockSpec((heads, N), lambda eb: (0, 0)),
            pl.BlockSpec((1, edge_tile), lambda eb: (0, eb)),
        ],
        out_specs=pl.BlockSpec((heads, edge_tile), lambda eb: (0, eb)),
        out_shape=jax.ShapeDtypeStruct((heads, E_pad), f32),
        compiler_params=pltpu.CompilerParams(
            dimension_semantics=("parallel",),       # uses the 2nd TensorCore on v7x
            vmem_limit_bytes=vmem_limit_bytes),
        cost_estimate=cost3,
    )(prodsT, mT, lT, enorm)

    # torch: v.view(N, h, d_k).transpose(1, 2) -> [N, d_k, h]  (wrapper-side layout plumbing)
    att = attT[:, :E].T
    prods = prodsT[:, :E].T
    v = vT.T.reshape(N, heads, d_k).transpose(0, 2, 1)
    return att, (v, prods)


# ----------------------------------------------------------------------------
# Pure-JAX reference (matches the PyTorch scaled_dot forward).
# ----------------------------------------------------------------------------
def _reference(x, edge, Wq, bq, Wk, bk, Wv, bv, heads, norm_idx):
    N = x.shape[0]
    A = Wq.shape[0]
    d_k = A // heads
    q = x @ Wq.T + bq
    k = x @ Wk.T + bk
    v = x @ Wv.T + bv
    q3 = q.reshape(N, heads, d_k).transpose(0, 2, 1)
    k3 = k.reshape(N, heads, d_k).transpose(0, 2, 1)
    v3 = v.reshape(N, heads, d_k).transpose(0, 2, 1)
    src = q3[edge[0]]
    dst = k3[edge[1]]
    prods = (src * dst).sum(axis=1) / np.sqrt(d_k)            # [E, heads]
    idx = edge[norm_idx]
    seg_max = jax.ops.segment_max(prods, idx, num_segments=N)
    seg_max = jnp.where(jnp.isfinite(seg_max), seg_max, 0.0)
    ex = jnp.exp(prods - seg_max[idx])
    seg_sum = jax.ops.segment_sum(ex, idx, num_segments=N)
    att = ex / (seg_sum[idx] + 1e-16)
    return att, v3, prods


if __name__ == "__main__":
    # Small deterministic problem.
    N, F = 16, 32              # nodes, in_features
    heads = 4
    attention_dim = 32         # == out_features
    d_k = attention_dim // heads
    E = 48                     # edges
    norm_idx = 0               # opt['attention_norm_idx']

    key = jax.random.PRNGKey(0)
    kx, ke, kbq, kbk, kbv = jax.random.split(key, 5)

    x = jax.random.normal(kx, (N, F), dtype=jnp.float32)
    edge = jax.random.randint(ke, (2, E), 0, N, dtype=jnp.int32)

    # nn.init.constant_(weight, 1e-5); biases keep torch default U(-1/sqrt(F), 1/sqrt(F)).
    w_const = 1e-5
    bound = 1.0 / math.sqrt(F)
    Wq = jnp.full((attention_dim, F), w_const, dtype=jnp.float32)   # torch layout [out, in]
    Wk = jnp.full((attention_dim, F), w_const, dtype=jnp.float32)
    Wv = jnp.full((attention_dim, F), w_const, dtype=jnp.float32)
    bq = jax.random.uniform(kbq, (attention_dim,), minval=-bound, maxval=bound)
    bk = jax.random.uniform(kbk, (attention_dim,), minval=-bound, maxval=bound)
    bv = jax.random.uniform(kbv, (attention_dim,), minval=-bound, maxval=bound)

    att, (v, prods) = sp_graph_trans_attention(
        x, edge, Wq, bq, Wk, bk, Wv, bv, heads=heads, norm_idx=norm_idx)
    jax.block_until_ready((att, v, prods))

    att_ref, v_ref, prods_ref = _reference(
        x, edge, Wq, bq, Wk, bk, Wv, bv, heads, norm_idx)

    assert att.shape == (E, heads) and prods.shape == (E, heads) and v.shape == (N, d_k, heads)
    np.testing.assert_allclose(np.asarray(prods), np.asarray(prods_ref), rtol=2e-2, atol=1e-3)
    np.testing.assert_allclose(np.asarray(att), np.asarray(att_ref), rtol=2e-2, atol=1e-3)
    np.testing.assert_allclose(np.asarray(v), np.asarray(v_ref), rtol=1e-3, atol=1e-4)

    print("KERNEL_OK")
</pallas_src>

<mosaic_0001>
module attributes {stable_mosaic.version = 11 : i64} {
  func.func @_project_kernel(%arg0: memref<32x16xf32, #tpu.memory_space<vmem>>, %arg1: memref<32x32xf32, #tpu.memory_space<vmem>>, %arg2: memref<32x1xf32, #tpu.memory_space<vmem>>, %arg3: memref<32x32xf32, #tpu.memory_space<vmem>>, %arg4: memref<32x1xf32, #tpu.memory_space<vmem>>, %arg5: memref<32x32xf32, #tpu.memory_space<vmem>>, %arg6: memref<32x1xf32, #tpu.memory_space<vmem>>, %arg7: memref<32x16xbf16, #tpu.memory_space<vmem>>, %arg8: memref<32x16xbf16, #tpu.memory_space<vmem>>, %arg9: memref<32x16xf32, #tpu.memory_space<vmem>>) attributes {dimension_semantics = [], scalar_prefetch = 0 : i64, scratch_operands = 0 : i64, tpu.core_type = #tpu.core_type<tc>} {
    %c0 = arith.constant 0 : index
    %c0_0 = arith.constant 0 : index
    %0 = vector.load %arg0[%c0, %c0_0] : memref<32x16xf32, #tpu.memory_space<vmem>>, vector<32x16xf32>
    %c0_1 = arith.constant 0 : index
    %c0_2 = arith.constant 0 : index
    %1 = vector.load %arg1[%c0_1, %c0_2] : memref<32x32xf32, #tpu.memory_space<vmem>>, vector<32x32xf32>
    %cst = arith.constant dense<0.000000e+00> : vector<32x16xf32>
    %2 = tpu.matmul %1, %0, %cst {dimension_numbers = #tpu.dot_dimension_numbers<[1], [0], [0], [1], [0, 0, 1, 1], [], []>} : vector<32x32xf32>, vector<32x16xf32>, vector<32x16xf32> -> vector<32x16xf32>
    %c0_3 = arith.constant 0 : index
    %c0_4 = arith.constant 0 : index
    %3 = vector.load %arg2[%c0_3, %c0_4] : memref<32x1xf32, #tpu.memory_space<vmem>>, vector<32x1xf32>
    %4 = vector.broadcast %3 : vector<32x1xf32> to vector<32x16xf32>
    %5 = arith.addf %2, %4 : vector<32x16xf32>
    %c0_5 = arith.constant 0 : index
    %c0_6 = arith.constant 0 : index
    %6 = vector.load %arg3[%c0_5, %c0_6] : memref<32x32xf32, #tpu.memory_space<vmem>>, vector<32x32xf32>
    %cst_7 = arith.constant dense<0.000000e+00> : vector<32x16xf32>
    %7 = tpu.matmul %6, %0, %cst_7 {dimension_numbers = #tpu.dot_dimension_numbers<[1], [0], [0], [1], [0, 0, 1, 1], [], []>} : vector<32x32xf32>, vector<32x16xf32>, vector<32x16xf32> -> vector<32x16xf32>
    %c0_8 = arith.constant 0 : index
    %c0_9 = arith.constant 0 : index
    %8 = vector.load %arg4[%c0_8, %c0_9] : memref<32x1xf32, #tpu.memory_space<vmem>>, vector<32x1xf32>
    %9 = vector.broadcast %8 : vector<32x1xf32> to vector<32x16xf32>
    %10 = arith.addf %7, %9 : vector<32x16xf32>
    %c0_10 = arith.constant 0 : index
    %c0_11 = arith.constant 0 : index
    %11 = vector.load %arg5[%c0_10, %c0_11] : memref<32x32xf32, #tpu.memory_space<vmem>>, vector<32x32xf32>
    %cst_12 = arith.constant dense<0.000000e+00> : vector<32x16xf32>
    %12 = tpu.matmul %11, %0, %cst_12 {dimension_numbers = #tpu.dot_dimension_numbers<[1], [0], [0], [1], [0, 0, 1, 1], [], []>} : vector<32x32xf32>, vector<32x16xf32>, vector<32x16xf32> -> vector<32x16xf32>
    %c0_13 = arith.constant 0 : index
    %c0_14 = arith.constant 0 : index
    %13 = vector.load %arg6[%c0_13, %c0_14] : memref<32x1xf32, #tpu.memory_space<vmem>>, vector<32x1xf32>
    %14 = vector.broadcast %13 : vector<32x1xf32> to vector<32x16xf32>
    %15 = arith.addf %12, %14 : vector<32x16xf32>
    %16 = arith.truncf %5 : vector<32x16xf32> to vector<32x16xbf16>
    %c0_15 = arith.constant 0 : index
    %c0_16 = arith.constant 0 : index
    %17 = vector.load %arg7[%c0_15, %c0_16] : memref<32x16xbf16, #tpu.memory_space<vmem>>, vector<32x16xbf16>
    tpu.vector_store %arg7[%c0_15, %c0_16], %16 {strides = array<i32>} : memref<32x16xbf16, #tpu.memory_space<vmem>>, vector<32x16xbf16>,
    %18 = arith.truncf %10 : vector<32x16xf32> to vector<32x16xbf16>
    %c0_17 = arith.constant 0 : index
    %c0_18 = arith.constant 0 : index
    %19 = vector.load %arg8[%c0_17, %c0_18] : memref<32x16xbf16, #tpu.memory_space<vmem>>, vector<32x16xbf16>
    tpu.vector_store %arg8[%c0_17, %c0_18], %18 {strides = array<i32>} : memref<32x16xbf16, #tpu.memory_space<vmem>>, vector<32x16xbf16>,
    %c0_19 = arith.constant 0 : index
    %c0_20 = arith.constant 0 : index
    %20 = vector.load %arg9[%c0_19, %c0_20] : memref<32x16xf32, #tpu.memory_space<vmem>>, vector<32x16xf32>
    tpu.vector_store %arg9[%c0_19, %c0_20], %15 {strides = array<i32>} : memref<32x16xf32, #tpu.memory_space<vmem>>, vector<32x16xf32>,
    return
  }
}

</mosaic_0001>

<bundles_post_ra>
// kernel: tpu_custom_call.1
= control target key start
LH: loop header
LB: loop body
LE: loop exit
PB: predicated region body
PF: predicated region fallthrough
CT: control target
= control target key end

     0   :  { %v572_v2 = vmov 0   ;;  %vm61_vm0 = vcmask 261120   ;;  %vm425_vm1 = vcmask 125952   ;;  %vm450_vm2 = vcmask 130048   ;;  %s763_s0 = inlined_call_operand.vmem [shape: f32[32,16], index: 0, kind: input, shape index: {}]   ;;  %s764_s1 = inlined_call_operand.vmem [shape: f32[32,32], index: 1, kind: input, shape index: {}]   ;;  %s765_s3 = inlined_call_operand.vmem [shape: f32[32,32], index: 3, kind: input, shape index: {}]   ;;  %s766_s5 = inlined_call_operand.vmem [shape: f32[32,32], index: 5, kind: input, shape index: {}]   ;;  %s767_s2 = inlined_call_operand.vmem [shape: f32[32,1], index: 2, kind: input, shape index: {}]   ;;  %s768_s4 = inlined_call_operand.vmem [shape: f32[32,1], index: 4, kind: input, shape index: {}]   ;;  %s769_s6 = inlined_call_operand.vmem [shape: f32[32,1], index: 6, kind: input, shape index: {}]   ;;  %s770_s7 = inlined_call_operand.vmem [shape: bf16[32,16], index: 7, kind: output, shape index: {0}]   ;;  %s771_s8 = inlined_call_operand.vmem [shape: bf16[32,16], index: 8, kind: output, shape index: {1}]   ;;  %s772_s9 = inlined_call_operand.vmem [shape: f32[32,16], index: 9, kind: output, shape index: {2}]  }
   0x1   :  { %v32_v0 = vld [vmem:[%s763_s0 + $0x18] sm:$0xff]  ;;  %v31_v1 = vld [vmem:[%s763_s0 + $0x10] sm:$0xff]  ;;  %571 = vset.pattern.permute.xlu1 %v572_v2  ;;  %570 = vset.pattern.permute.xlu0 %v572_v2  ;;  %v30_v3 = vld [vmem:[%s763_s0 + $0x8] sm:$0xff] }
   0x2   :  { %519 = vmatprep.subr.mxu0 %v32_v0  ;;  %533 = vmatprep.subr.mxu1 %v32_v0  ;;  %v29_v4 = vld [vmem:[%s763_s0] sm:$0xff]  ;;  %v34_v7 = vld [vmem:[%s764_s1 + $0x8] sm:$0xff]  ;;  %v35_v9 = vld [vmem:[%s764_s1 + $0x10] sm:$0xff] }
   0x3   :  { %520 = vmatpush3.msra.mxu0 %v32_v0  ;;  %534 = vmatpush3.msra.mxu1 %v32_v0  ;;  %v33_v5 = vld [vmem:[%s764_s1] sm:$0xff]  ;;  %v160_v8 = vld [vmem:[%s765_s3 + $0x8] sm:$0xff]  ;;  %v161_v10 = vld [vmem:[%s765_s3 + $0x10] sm:$0xff] }
   0x4   :  { %521 = vmatprep.subr.mxu0 %v31_v1  ;;  %535 = vmatprep.subr.mxu1 %v31_v1  ;;  %v159_v6 = vld [vmem:[%s765_s3] sm:$0xff]  ;;  %v36_v11 = vld [vmem:[%s764_s1 + $0x18] sm:$0xff]  ;;  %v286_v14 = vld [vmem:[%s766_s5 + $0x10] sm:$0xff] }
   0x5   :  { %522 = vmatpush3.msra.mxu0 %v31_v1  ;;  %536 = vmatpush3.msra.mxu1 %v31_v1  ;;  %v162_v12 = vld [vmem:[%s765_s3 + $0x18] sm:$0xff]  ;;  %v284_v13 = vld [vmem:[%s766_s5] sm:$0xff]  ;;  %v285_v15 = vld [vmem:[%s766_s5 + $0x8] sm:$0xff] }
   0x6   :  { %523 = vmatprep.subr.mxu0 %v30_v3  ;;  %537 = vmatprep.subr.mxu1 %v30_v3  ;;  %v287_v16 = vld [vmem:[%s766_s5 + $0x18] sm:$0xff]  ;;  %v39_v17 = vld [vmem:[%s767_s2 + $0x10] sm:$0xff]  ;;  %v37_v18 = vld [vmem:[%s767_s2] sm:$0xff] }
   0x7   :  { %524 = vmatpush3.msra.mxu0 %v30_v3  ;;  %538 = vmatpush3.msra.mxu1 %v30_v3  ;;  %v40_v19 = vld [vmem:[%s767_s2 + $0x18] sm:$0xff]  ;;  %v38_v20 = vld [vmem:[%s767_s2 + $0x8] sm:$0xff]  ;;  %v163_v22 = vld [vmem:[%s768_s4] sm:$0xff] }
   0x8   :  { %525 = vmatprep.subr.mxu0 %v29_v4  ;;  %539 = vmatprep.subr.mxu1 %v29_v4  ;;  %v164_v21 = vld [vmem:[%s768_s4 + $0x8] sm:$0xff]  ;;  %v166_v23 = vld [vmem:[%s768_s4 + $0x18] sm:$0xff]  ;;  %v165_v24 = vld [vmem:[%s768_s4 + $0x10] sm:$0xff] }
   0x9   :  { %526 = vmatpush3.msra.mxu0 %v29_v4  ;;  %527 = vmatprep.mubr.msk.f32.mxu0 %vm61_vm0, %v33_v5  ;;  %v289_v25 = vld [vmem:[%s769_s6 + $0x8] sm:$0xff]  ;;  %v288_v26 = vld [vmem:[%s769_s6] sm:$0xff]  ;;  %v291_v27 = vld [vmem:[%s769_s6 + $0x18] sm:$0xff] }
   0xa   :  { %540 = vmatpush3.msra.mxu1 %v29_v4  ;;  %541 = vmatprep.mubr.msk.f32.mxu1 %vm61_vm0, %v159_v6  ;;  %v290_v28 = vld [vmem:[%s769_s6 + $0x10] sm:$0xff] }
   0xb   :  { %528 = vmatmul.mubr.msk.f32.vlgmr.msra.gmra.mxu0 %vm61_vm0, %v34_v7  ;;  %542 = vmatmul.mubr.msk.f32.vlgmr.msra.gmra.mxu1 %vm61_vm0, %v160_v8 }
   0xc   :  { %547 = vmatprep.subr.mxu0 %v32_v0  ;;  %561 = vmatprep.subr.mxu1 %v32_v0 }
   0xd   :  { %548 = vmatpush3.msra.mxu0 %v32_v0  ;;  %565 = vmatpush3.msra.mxu1 %v32_v0 }
   0xe   :  { %549 = vmatprep.subr.mxu0 %v31_v1  ;;  %562 = vmatprep.subr.mxu1 %v31_v1 }
   0xf   :  { %530 = vmatprep.mubr.msk.f32.mxu0 %vm61_vm0, %v35_v9  ;;  %544 = vmatprep.mubr.msk.f32.mxu1 %vm61_vm0, %v161_v10 }
  0x10   :  { %550 = vmatpush3.msra.mxu0 %v31_v1  ;;  %566 = vmatpush3.msra.mxu1 %v31_v1 }
  0x11   :  { %531 = vmatmul.mubr.msk.f32.gmra.mxu0 %vm61_vm0, %v36_v11  ;;  %545 = vmatmul.mubr.msk.f32.gmra.mxu1 %vm61_vm0, %v162_v12 }
  0x12   :  { %551 = vmatprep.subr.mxu0 %v30_v3  ;;  %563 = vmatprep.subr.mxu1 %v30_v3 }
  0x13   :  { %552 = vmatpush3.msra.mxu0 %v30_v3  ;;  %567 = vmatpush3.msra.mxu1 %v30_v3 }
  0x14   :  { %553 = vmatprep.subr.mxu0 %v29_v4  ;;  %564 = vmatprep.subr.mxu1 %v29_v4 }
  0x15   :  { %554 = vmatpush3.msra.mxu0 %v29_v4  ;;  %568 = vmatpush3.msra.mxu1 %v29_v4 }
  0x16   :  { %555 = vmatprep.mubr.msk.f32.mxu0 %vm61_vm0, %v284_v13  ;;  %558 = vmatprep.mubr.msk.f32.mxu1 %vm61_vm0, %v286_v14 }
  0x17   :  { %556 = vmatmul.mubr.msk.f32.vlgmr.msra.gmra.mxu0 %vm61_vm0, %v285_v15  ;;  %559 = vmatmul.mubr.msk.f32.vlgmr.msra.gmra.mxu1 %vm61_vm0, %v287_v16 }
  0x18   :  { %53 = vperm.xlu1 %571, %v39_v17   ;;  %43 = vperm.xlu0 %570, %v37_v18  }
  0x1c   :  { %58 = vperm.xlu1 %571, %v40_v19   ;;  %48 = vperm.xlu0 %570, %v38_v20  }
  0x20   :  { %174 = vperm.xlu1 %571, %v164_v21   ;;  %169 = vperm.xlu0 %570, %v163_v22  }
  0x24   :  { %184 = vperm.xlu1 %571, %v166_v23   ;;  %179 = vperm.xlu0 %570, %v165_v24  }
  0x28   :  { %299 = vperm.xlu1 %571, %v289_v25   ;;  %294 = vperm.xlu0 %570, %v288_v26  }
  0x2c   :  { %309 = vperm.xlu1 %571, %v291_v27   ;;  %304 = vperm.xlu0 %570, %v290_v28  }
  0x93   :  { %v54_v29 = vpop.permute.xlu1 %53  ;;  %v44_v30 = vpop.permute.xlu0 %43 }
  0x97   :  { %v59_v31 = vpop.permute.xlu1 %58  ;;  %v49_v32 = vpop.permute.xlu0 %48 }
  0x9b   :  { %v175_v33 = vpop.permute.xlu1 %174  ;;  %v170_v34 = vpop.permute.xlu0 %169 }
  0x9f   :  { %v185_v35 = vpop.permute.xlu1 %184  ;;  %v180_v38 = vpop.permute.xlu0 %179 }
  0xa3   :  { %v300_v47 = vpop.permute.xlu1 %299  ;;  %v295_v52 = vpop.permute.xlu0 %294 }
  0xa7   :  { %v310_v61 = vpop.permute.xlu1 %309  ;;  %v305_v2 = vpop.permute.xlu0 %304 }
  0xcb   :  { %v529_v36 = vpop.f32.mrf.mxu0  ;;  %v543_v37 = vpop.f32.mrf.mxu1 }
  0xcc   :  { %v146_v39 = vadd.f32 %v529_v36, %v49_v32  ;;  %v271_v40 = vadd.f32 %v543_v37, %v175_v33 }
  0xcd   :  { %v140_v41 = vpop.f32.mrf.mxu0  ;;  %v265_v42 = vpop.f32.mrf.mxu1 }
  0xce   :  { %v488_v43 = vpack.c.bf16 %v146_v39, %v146_v39  ;;  %v492_v44 = vpack.c.bf16 %v271_v40, %v271_v40  ;;  %v141_v45 = vadd.f32 %v140_v41, %v44_v30  ;;  %v266_v46 = vadd.f32 %v265_v42, %v170_v34 }
  0xd0   :  { %427 = vst.msk [vmem:[%s770_s7 + $0x4] sm:$0xf] %vm425_vm1, %v488_v43  ;;  %447 = vst.msk [vmem:[%s771_s8 + $0x4] sm:$0xf] %vm425_vm1, %v492_v44  ;;  %v487_v48 = vpack.c.bf16 %v141_v45, %v141_v45  ;;  %v491_v49 = vpack.c.bf16 %v266_v46, %v266_v46 }
  0xd1   :  { %v532_v50 = vpop.f32.mrf.mxu0  ;;  %v546_v51 = vpop.f32.mrf.mxu1 }
  0xd2   :  { %426 = vst.msk [vmem:[%s770_s7] sm:$0xf] %vm425_vm1, %v487_v48  ;;  %446 = vst.msk [vmem:[%s771_s8] sm:$0xf] %vm425_vm1, %v491_v49  ;;  %v156_v53 = vadd.f32 %v532_v50, %v59_v31  ;;  %v281_v54 = vadd.f32 %v546_v51, %v185_v35 }
  0xd3   :  { %v150_v55 = vpop.f32.mrf.mxu0  ;;  %v275_v56 = vpop.f32.mrf.mxu1 }
  0xd4   :  { %v490_v57 = vpack.c.bf16 %v156_v53, %v156_v53  ;;  %v494_v58 = vpack.c.bf16 %v281_v54, %v281_v54  ;;  %v151_v59 = vadd.f32 %v150_v55, %v54_v29  ;;  %v276_v60 = vadd.f32 %v275_v56, %v180_v38 }
  0xd6   :  { %429 = vst.msk [vmem:[%s770_s7 + $0xc] sm:$0xf] %vm425_vm1, %v490_v57  ;;  %449 = vst.msk [vmem:[%s771_s8 + $0xc] sm:$0xf] %vm425_vm1, %v494_v58  ;;  %v489_v62 = vpack.c.bf16 %v151_v59, %v151_v59  ;;  %v493_v63 = vpack.c.bf16 %v276_v60, %v276_v60 }
  0xd7   :  { %v557_v0 = vpop.f32.mrf.mxu0  ;;  %v560_v1 = vpop.f32.mrf.mxu1 }
  0xd8   :  { %428 = vst.msk [vmem:[%s770_s7 + $0x8] sm:$0xf] %vm425_vm1, %v489_v62  ;;  %448 = vst.msk [vmem:[%s771_s8 + $0x8] sm:$0xf] %vm425_vm1, %v493_v63  ;;  %v396_v3 = vadd.f32 %v557_v0, %v300_v47  ;;  %v406_v4 = vadd.f32 %v560_v1, %v310_v61 }
  0xd9   :  { %v390_v5 = vpop.f32.mrf.mxu0  ;;  %v400_v6 = vpop.f32.mrf.mxu1 }
  0xda   :  { %452 = vst.msk [vmem:[%s772_s9 + $0x8] sm:$0xff] %vm450_vm2, %v396_v3  ;;  %454 = vst.msk [vmem:[%s772_s9 + $0x18] sm:$0xff] %vm450_vm2, %v406_v4  ;;  %v391_v7 = vadd.f32 %v390_v5, %v295_v52  ;;  %v401_v8 = vadd.f32 %v400_v6, %v305_v2 }
  0xdc   :  { %451 = vst.msk [vmem:[%s772_s9] sm:$0xff] %vm450_vm2, %v391_v7  ;;  %453 = vst.msk [vmem:[%s772_s9 + $0x10] sm:$0xff] %vm450_vm2, %v401_v8 }

</bundles_post_ra>
